<compile_context>
chip_gen: v5e
topology: v5e:2x2
jax: 0.10.0
libtpu: 0.0.40
codegen_flags: <defaults>
</compile_context>

<pallas_src>
import functools

import jax
import jax.numpy as jnp
from jax.experimental import pallas as pl
from jax.experimental.pallas import tpu as pltpu


def _round_up(x, m):
    return ((x + m - 1) // m) * m


# ----------------------------- Pallas kernel -------------------------------
def _char_cnn_highway_kernel(ids_ref, m_ref, bc_ref, whw_ref, bhw_ref, out_ref,
                             *, kw, pad):
    """Fused char-gather + Conv1d + ReLU + max-pool + Highway for one word tile.

    ids_ref : (TN, MW)          int32 char ids of TN words
    m_ref   : (V_pad, kw*E)     conv weight folded into the char table,
                                taps concatenated along lanes (bf16)
    bc_ref  : (1, E)            conv bias (f32)
    whw_ref : (E, 2E)           [proj | gate] highway weights, transposed (bf16)
    bhw_ref : (1, 2E)           [proj | gate] highway biases (f32)
    out_ref : (TN, E)           f32
    """
    ids = ids_ref[...]                       # (TN, MW) int32
    tn, mw = ids.shape
    v_pad = m_ref.shape[0]
    e = out_ref.shape[-1]
    l_out = mw + 2 * pad - kw + 1

    # NOTE: char ids must be < V_pad (128); guaranteed for this vocab (30).
    iota_v = jax.lax.broadcasted_iota(jnp.int32, (tn, v_pad), 1)

    # One matmul per char position: onehot_s @ M_all -> (TN, kw*E), then
    # scatter its kw tap-slices into the per-timestep accumulators with lane
    # slices + VPU adds.  onehot_s dies immediately after its matmul.
    acc = [None] * l_out
    for s in range(mw):
        onehot = (ids[:, s:s + 1] == iota_v).astype(jnp.bfloat16)   # (TN, V_pad)
        prod = jnp.dot(onehot, m_ref[...],
                       preferred_element_type=jnp.float32)          # (TN, kw*E)
        for j in range(kw):
            t = s + pad - j          # conv timestep this tap contributes to
            if 0 <= t < l_out:
                sl = prod[:, j * e:(j + 1) * e]                     # (TN, E)
                acc[t] = sl if acc[t] is None else acc[t] + sl

    # max-pool over word length; bias+ReLU hoisted out of the max chain
    # (both are monotone, bias is timestep-independent).
    mx = acc[0]
    for t in range(1, l_out):
        mx = jnp.maximum(mx, acc[t])
    pooled = jnp.maximum(mx + bc_ref[...], 0.0)                     # (TN, E) f32

    # Highway: single fused bf16 matmul for proj + gate, f32 accumulate.
    hw = jnp.dot(pooled.astype(jnp.bfloat16), whw_ref[...],
                 preferred_element_type=jnp.float32) + bhw_ref[...]  # (TN, 2E)
    proj = jnp.maximum(hw[:, :e], 0.0)
    gate = pl.reciprocal(1.0 + jnp.exp(-hw[:, e:]), approx=True)     # sigmoid

    # TODO(synk): nn.Dropout(0.3) treated as identity (eval/inference mode).
    out_ref[...] = gate * proj + (1.0 - gate) * pooled


def char_cnn_word_embed(ids_2d, m_all, bc, hw_w, hw_b, *, kw=5, pad=1,
                        tn_max=512):
    """ids_2d: (N, MW) int32.  Returns (N, E) float32 word embeddings."""
    assert tn_max % 16 == 0
    n, mw = ids_2d.shape
    v_pad = m_all.shape[0]
    e = bc.shape[-1]

    # Tile: multiple of 16 (bf16 sublane packing); cap it so the grid keeps at
    # least 2 steps when possible (both v7x TensorCores get work under the
    # "parallel" axis) instead of collapsing to grid=(1,).
    tn = max(16, min(tn_max, _round_up(pl.cdiv(n, 2), 16)))
    n_pad = _round_up(max(n, tn), tn)
    if n_pad != n:
        ids_2d = jnp.pad(ids_2d, ((0, n_pad - n), (0, 0)))   # pad-char rows
    grid = (n_pad // tn,)

    kernel = functools.partial(_char_cnn_highway_kernel, kw=kw, pad=pad)

    out = pl.pallas_call(
        kernel,
        out_shape=jax.ShapeDtypeStruct((n_pad, e), jnp.float32),
        grid_spec=pltpu.PrefetchScalarGridSpec(
            num_scalar_prefetch=0,
            grid=grid,
            in_specs=[
                pl.BlockSpec((tn, mw), lambda i: (i, 0)),            # char ids
                pl.BlockSpec((v_pad, kw * e), lambda i: (0, 0)),      # folded table
                pl.BlockSpec((1, e), lambda i: (0, 0)),               # conv bias
                pl.BlockSpec((e, 2 * e), lambda i: (0, 0)),           # highway W
                pl.BlockSpec((1, 2 * e), lambda i: (0, 0)),           # highway b
            ],
            out_specs=pl.BlockSpec((tn, e), lambda i: (i, 0)),
        ),
        compiler_params=pltpu.CompilerParams(
            dimension_semantics=("parallel",)),
    )(ids_2d, m_all, bc, hw_w, hw_b)
    return out[:n]


# ------------------------------ JAX glue ------------------------------------
def prepare_params(char_emb, conv_w, conv_b, hw_proj_w, hw_proj_b,
                   hw_gate_w, hw_gate_b):
    """One-time (input-independent) parameter preprocessing."""
    v, _ = char_emb.shape
    e, _, kw = conv_w.shape
    v_pad = _round_up(max(v, 8), 128)
    emb_p = jnp.zeros((v_pad, char_emb.shape[1]), jnp.float32).at[:v, :].set(char_emb)
    # Fold the conv weight into the char table and concatenate the kw taps
    # along lanes: M_all[v, j*E + e] = sum_c emb[v, c] * conv_w[e, c, j].
    m_all = jnp.einsum("vc,ecj->vje", emb_p, conv_w).reshape(v_pad, kw * e)
    m_all = m_all.astype(jnp.bfloat16)                                # MXU RHS
    hw_w = jnp.concatenate([hw_proj_w.T, hw_gate_w.T], axis=1)        # (E, 2E)
    hw_w = hw_w.astype(jnp.bfloat16)
    hw_b = jnp.concatenate([hw_proj_b, hw_gate_b]).reshape(1, 2 * e)  # (1, 2E)
    return dict(m_all=m_all, conv_b=conv_b.reshape(1, e).astype(jnp.float32),
                hw_w=hw_w, hw_b=hw_b.astype(jnp.float32), kw=kw)


def model_embeddings_forward(char_ids, prep, *, tn_max=512):
    """char_ids: (sent_len, batch, max_word_len) int32
       returns : (sent_len, batch, embed_size) float32"""
    sent_len, batch, m_word = char_ids.shape
    e = prep["conv_b"].shape[-1]
    ids_2d = char_ids.reshape(sent_len * batch, m_word).astype(jnp.int32)
    out = char_cnn_word_embed(ids_2d, prep["m_all"], prep["conv_b"],
                              prep["hw_w"], prep["hw_b"],
                              kw=prep["kw"], pad=1, tn_max=tn_max)
    return out.reshape(sent_len, batch, e)


# --------------------------- pure-JAX reference ------------------------------
def reference_forward(char_ids, params):
    sent_len, batch, m_word = char_ids.shape
    emb = params["char_emb"]
    conv_w, conv_b = params["conv_w"], params["conv_b"]      # (E,C,kw), (E,)
    kw, pad = conv_w.shape[2], 1

    x = jnp.take(emb, char_ids.reshape(-1, m_word), axis=0)  # (N, MW, C)
    x = jnp.transpose(x, (0, 2, 1))                          # (N, C, MW)
    x_pad = jnp.pad(x, ((0, 0), (0, 0), (pad, pad)))
    l_out = m_word + 2 * pad - kw + 1
    taps = jnp.stack([x_pad[:, :, j:j + l_out] for j in range(kw)], axis=2)
    conv = jnp.einsum("nckl,eck->nle", taps, conv_w) + conv_b[None, None, :]
    conv_out = jnp.max(jnp.maximum(conv, 0.0), axis=1)       # (N, E)

    proj = jnp.maximum(conv_out @ params["hw_proj_w"].T + params["hw_proj_b"], 0.0)
    gate = jax.nn.sigmoid(conv_out @ params["hw_gate_w"].T + params["hw_gate_b"])
    out = gate * proj + (1.0 - gate) * conv_out
    return out.reshape(sent_len, batch, -1)


# ------------------------------- main ----------------------------------------
if __name__ == "__main__":
    key = jax.random.PRNGKey(0)

    # Module hyperparameters (synthetic char vocab).
    embed_size = 32          # word embedding size E
    char_embed_size = 50     # fixed in module __init__
    vocab_size = 30          # len(vocab.char2id)
    pad_idx = 0              # vocab.char2id['<pad>']
    kernel_width = 5

    # Problem shapes (small).
    sent_len, batch, m_word = 5, 4, 8

    keys = jax.random.split(key, 8)
    char_emb = 0.1 * jax.random.normal(keys[0], (vocab_size, char_embed_size),
                                       dtype=jnp.float32)
    char_emb = char_emb.at[pad_idx].set(0.0)     # padding_idx row is zero

    conv_w = 0.1 * jax.random.normal(
        keys[1], (embed_size, char_embed_size, kernel_width), dtype=jnp.float32)
    conv_b = 0.1 * jax.random.normal(keys[2], (embed_size,), dtype=jnp.float32)

    hw_proj_w = 0.1 * jax.random.normal(keys[3], (embed_size, embed_size),
                                        dtype=jnp.float32)
    hw_proj_b = 0.1 * jax.random.normal(keys[4], (embed_size,), dtype=jnp.float32)
    hw_gate_w = 0.1 * jax.random.normal(keys[5], (embed_size, embed_size),
                                        dtype=jnp.float32)
    hw_gate_b = 0.1 * jax.random.normal(keys[6], (embed_size,), dtype=jnp.float32)

    char_ids = jax.random.randint(keys[7], (sent_len, batch, m_word),
                                  0, vocab_size, dtype=jnp.int32)

    params = dict(char_emb=char_emb, conv_w=conv_w, conv_b=conv_b,
                  hw_proj_w=hw_proj_w, hw_proj_b=hw_proj_b,
                  hw_gate_w=hw_gate_w, hw_gate_b=hw_gate_b)
    prep = prepare_params(char_emb, conv_w, conv_b, hw_proj_w, hw_proj_b,
                          hw_gate_w, hw_gate_b)

    # N=20 words -> tile of 16 rows, padded to 32, grid=(2,): exercises tiling,
    # the ragged-tail padding path and the 2-step-grid (v7x 2-TC) logic.
    out = model_embeddings_forward(char_ids, prep)
    out = jax.block_until_ready(out)

    ref = reference_forward(char_ids, params)
    assert out.shape == (sent_len, batch, embed_size), out.shape
    # bf16 MXU operands + approx-reciprocal sigmoid -> loosened tolerance vs
    # the pure-f32 reference.
    assert jnp.allclose(out, ref, atol=2e-2, rtol=2e-2), "mismatch vs reference"

    print("KERNEL_OK")
</pallas_src>

<mosaic_0001>
module attributes {stable_mosaic.version = 11 : i64} {
  func.func @_char_cnn_highway_kernel(%arg0: i32, %arg1: memref<16x8xi32, #tpu.memory_space<vmem>>, %arg2: memref<128x160xbf16, #tpu.memory_space<vmem>>, %arg3: memref<1x32xf32, #tpu.memory_space<vmem>>, %arg4: memref<32x64xbf16, #tpu.memory_space<vmem>>, %arg5: memref<1x64xf32, #tpu.memory_space<vmem>>, %arg6: memref<16x32xf32, #tpu.memory_space<vmem>>) attributes {dimension_semantics = [#tpu.dimension_semantics<parallel>], iteration_bounds = array<i64: 2>, scalar_prefetch = 0 : i64, scratch_operands = 0 : i64, tpu.core_type = #tpu.core_type<tc>, window_params = [{transform_indices = @transform_0, window_bounds = array<i64: 16, 8>}, {pipeline_mode = #tpu.pipeline_mode<synchronous>, transform_indices = @transform_1, window_bounds = array<i64: 128, 160>}, {pipeline_mode = #tpu.pipeline_mode<synchronous>, transform_indices = @transform_2, window_bounds = array<i64: 1, 32>}, {pipeline_mode = #tpu.pipeline_mode<synchronous>, transform_indices = @transform_3, window_bounds = array<i64: 32, 64>}, {pipeline_mode = #tpu.pipeline_mode<synchronous>, transform_indices = @transform_4, window_bounds = array<i64: 1, 64>}, {transform_indices = @transform_5, window_bounds = array<i64: 16, 32>}]} {
    %c0 = arith.constant 0 : index
    %c0_0 = arith.constant 0 : index
    %0 = vector.load %arg1[%c0, %c0_0] : memref<16x8xi32, #tpu.memory_space<vmem>>, vector<16x8xi32>
    %1 = tpu.iota {dimensions = array<i32: 1>} : vector<16x128xi32>
    %2 = vector.extract_strided_slice %0 {offsets = [0, 0], sizes = [16, 1], strides = [1, 1]} : vector<16x8xi32> to vector<16x1xi32>
    %3 = vector.broadcast %2 : vector<16x1xi32> to vector<16x128xi32>
    %4 = arith.cmpi eq, %3, %1 : vector<16x128xi32>
    %5 = arith.extui %4 : vector<16x128xi1> to vector<16x128xi32>
    %6 = arith.sitofp %5 : vector<16x128xi32> to vector<16x128xf32>
    %7 = arith.truncf %6 : vector<16x128xf32> to vector<16x128xbf16>
    %c0_1 = arith.constant 0 : index
    %c0_2 = arith.constant 0 : index
    %8 = vector.load %arg2[%c0_1, %c0_2] : memref<128x160xbf16, #tpu.memory_space<vmem>>, vector<128x160xbf16>
    %cst = arith.constant dense<0.000000e+00> : vector<16x160xf32>
    %9 = tpu.matmul %7, %8, %cst {dimension_numbers = #tpu.dot_dimension_numbers<[1], [0], [0], [1], [0, 0, 1, 1], [], []>} : vector<16x128xbf16>, vector<128x160xbf16>, vector<16x160xf32> -> vector<16x160xf32>
    %10 = vector.extract_strided_slice %9 {offsets = [0, 0], sizes = [16, 32], strides = [1, 1]} : vector<16x160xf32> to vector<16x32xf32>
    %11 = vector.extract_strided_slice %9 {offsets = [0, 32], sizes = [16, 32], strides = [1, 1]} : vector<16x160xf32> to vector<16x32xf32>
    %12 = vector.extract_strided_slice %0 {offsets = [0, 1], sizes = [16, 1], strides = [1, 1]} : vector<16x8xi32> to vector<16x1xi32>
    %13 = vector.broadcast %12 : vector<16x1xi32> to vector<16x128xi32>
    %14 = arith.cmpi eq, %13, %1 : vector<16x128xi32>
    %15 = arith.extui %14 : vector<16x128xi1> to vector<16x128xi32>
    %16 = arith.sitofp %15 : vector<16x128xi32> to vector<16x128xf32>
    %17 = arith.truncf %16 : vector<16x128xf32> to vector<16x128xbf16>
    %c0_3 = arith.constant 0 : index
    %c0_4 = arith.constant 0 : index
    %18 = vector.load %arg2[%c0_3, %c0_4] : memref<128x160xbf16, #tpu.memory_space<vmem>>, vector<128x160xbf16>
    %cst_5 = arith.constant dense<0.000000e+00> : vector<16x160xf32>
    %19 = tpu.matmul %17, %18, %cst_5 {dimension_numbers = #tpu.dot_dimension_numbers<[1], [0], [0], [1], [0, 0, 1, 1], [], []>} : vector<16x128xbf16>, vector<128x160xbf16>, vector<16x160xf32> -> vector<16x160xf32>
    %20 = vector.extract_strided_slice %19 {offsets = [0, 0], sizes = [16, 32], strides = [1, 1]} : vector<16x160xf32> to vector<16x32xf32>
    %21 = vector.extract_strided_slice %19 {offsets = [0, 32], sizes = [16, 32], strides = [1, 1]} : vector<16x160xf32> to vector<16x32xf32>
    %22 = arith.addf %10, %21 : vector<16x32xf32>
    %23 = vector.extract_strided_slice %19 {offsets = [0, 64], sizes = [16, 32], strides = [1, 1]} : vector<16x160xf32> to vector<16x32xf32>
    %24 = arith.addf %11, %23 : vector<16x32xf32>
    %25 = vector.extract_strided_slice %0 {offsets = [0, 2], sizes = [16, 1], strides = [1, 1]} : vector<16x8xi32> to vector<16x1xi32>
    %26 = vector.broadcast %25 : vector<16x1xi32> to vector<16x128xi32>
    %27 = arith.cmpi eq, %26, %1 : vector<16x128xi32>
    %28 = arith.extui %27 : vector<16x128xi1> to vector<16x128xi32>
    %29 = arith.sitofp %28 : vector<16x128xi32> to vector<16x128xf32>
    %30 = arith.truncf %29 : vector<16x128xf32> to vector<16x128xbf16>
    %c0_6 = arith.constant 0 : index
    %c0_7 = arith.constant 0 : index
    %31 = vector.load %arg2[%c0_6, %c0_7] : memref<128x160xbf16, #tpu.memory_space<vmem>>, vector<128x160xbf16>
    %cst_8 = arith.constant dense<0.000000e+00> : vector<16x160xf32>
    %32 = tpu.matmul %30, %31, %cst_8 {dimension_numbers = #tpu.dot_dimension_numbers<[1], [0], [0], [1], [0, 0, 1, 1], [], []>} : vector<16x128xbf16>, vector<128x160xbf16>, vector<16x160xf32> -> vector<16x160xf32>
    %33 = vector.extract_strided_slice %32 {offsets = [0, 0], sizes = [16, 32], strides = [1, 1]} : vector<16x160xf32> to vector<16x32xf32>
    %34 = vector.extract_strided_slice %32 {offsets = [0, 32], sizes = [16, 32], strides = [1, 1]} : vector<16x160xf32> to vector<16x32xf32>
    %35 = arith.addf %20, %34 : vector<16x32xf32>
    %36 = vector.extract_strided_slice %32 {offsets = [0, 64], sizes = [16, 32], strides = [1, 1]} : vector<16x160xf32> to vector<16x32xf32>
    %37 = arith.addf %22, %36 : vector<16x32xf32>
    %38 = vector.extract_strided_slice %32 {offsets = [0, 96], sizes = [16, 32], strides = [1, 1]} : vector<16x160xf32> to vector<16x32xf32>
    %39 = arith.addf %24, %38 : vector<16x32xf32>
    %40 = vector.extract_strided_slice %0 {offsets = [0, 3], sizes = [16, 1], strides = [1, 1]} : vector<16x8xi32> to vector<16x1xi32>
    %41 = vector.broadcast %40 : vector<16x1xi32> to vector<16x128xi32>
    %42 = arith.cmpi eq, %41, %1 : vector<16x128xi32>
    %43 = arith.extui %42 : vector<16x128xi1> to vector<16x128xi32>
    %44 = arith.sitofp %43 : vector<16x128xi32> to vector<16x128xf32>
    %45 = arith.truncf %44 : vector<16x128xf32> to vector<16x128xbf16>
    %c0_9 = arith.constant 0 : index
    %c0_10 = arith.constant 0 : index
    %46 = vector.load %arg2[%c0_9, %c0_10] : memref<128x160xbf16, #tpu.memory_space<vmem>>, vector<128x160xbf16>
    %cst_11 = arith.constant dense<0.000000e+00> : vector<16x160xf32>
    %47 = tpu.matmul %45, %46, %cst_11 {dimension_numbers = #tpu.dot_dimension_numbers<[1], [0], [0], [1], [0, 0, 1, 1], [], []>} : vector<16x128xbf16>, vector<128x160xbf16>, vector<16x160xf32> -> vector<16x160xf32>
    %48 = vector.extract_strided_slice %47 {offsets = [0, 0], sizes = [16, 32], strides = [1, 1]} : vector<16x160xf32> to vector<16x32xf32>
    %49 = vector.extract_strided_slice %47 {offsets = [0, 32], sizes = [16, 32], strides = [1, 1]} : vector<16x160xf32> to vector<16x32xf32>
    %50 = arith.addf %33, %49 : vector<16x32xf32>
    %51 = vector.extract_strided_slice %47 {offsets = [0, 64], sizes = [16, 32], strides = [1, 1]} : vector<16x160xf32> to vector<16x32xf32>
    %52 = arith.addf %35, %51 : vector<16x32xf32>
    %53 = vector.extract_strided_slice %47 {offsets = [0, 96], sizes = [16, 32], strides = [1, 1]} : vector<16x160xf32> to vector<16x32xf32>
    %54 = arith.addf %37, %53 : vector<16x32xf32>
    %55 = vector.extract_strided_slice %47 {offsets = [0, 128], sizes = [16, 32], strides = [1, 1]} : vector<16x160xf32> to vector<16x32xf32>
    %56 = arith.addf %39, %55 : vector<16x32xf32>
    %57 = vector.extract_strided_slice %0 {offsets = [0, 4], sizes = [16, 1], strides = [1, 1]} : vector<16x8xi32> to vector<16x1xi32>
    %58 = vector.broadcast %57 : vector<16x1xi32> to vector<16x128xi32>
    %59 = arith.cmpi eq, %58, %1 : vector<16x128xi32>
    %60 = arith.extui %59 : vector<16x128xi1> to vector<16x128xi32>
    %61 = arith.sitofp %60 : vector<16x128xi32> to vector<16x128xf32>
    %62 = arith.truncf %61 : vector<16x128xf32> to vector<16x128xbf16>
    %c0_12 = arith.constant 0 : index
    %c0_13 = arith.constant 0 : index
    %63 = vector.load %arg2[%c0_12, %c0_13] : memref<128x160xbf16, #tpu.memory_space<vmem>>, vector<128x160xbf16>
    %cst_14 = arith.constant dense<0.000000e+00> : vector<16x160xf32>
    %64 = tpu.matmul %62, %63, %cst_14 {dimension_numbers = #tpu.dot_dimension_numbers<[1], [0], [0], [1], [0, 0, 1, 1], [], []>} : vector<16x128xbf16>, vector<128x160xbf16>, vector<16x160xf32> -> vector<16x160xf32>
    %65 = vector.extract_strided_slice %64 {offsets = [0, 0], sizes = [16, 32], strides = [1, 1]} : vector<16x160xf32> to vector<16x32xf32>
    %66 = vector.extract_strided_slice %64 {offsets = [0, 32], sizes = [16, 32], strides = [1, 1]} : vector<16x160xf32> to vector<16x32xf32>
    %67 = arith.addf %48, %66 : vector<16x32xf32>
    %68 = vector.extract_strided_slice %64 {offsets = [0, 64], sizes = [16, 32], strides = [1, 1]} : vector<16x160xf32> to vector<16x32xf32>
    %69 = arith.addf %50, %68 : vector<16x32xf32>
    %70 = vector.extract_strided_slice %64 {offsets = [0, 96], sizes = [16, 32], strides = [1, 1]} : vector<16x160xf32> to vector<16x32xf32>
    %71 = arith.addf %52, %70 : vector<16x32xf32>
    %72 = vector.extract_strided_slice %64 {offsets = [0, 128], sizes = [16, 32], strides = [1, 1]} : vector<16x160xf32> to vector<16x32xf32>
    %73 = arith.addf %54, %72 : vector<16x32xf32>
    %74 = vector.extract_strided_slice %0 {offsets = [0, 5], sizes = [16, 1], strides = [1, 1]} : vector<16x8xi32> to vector<16x1xi32>
    %75 = vector.broadcast %74 : vector<16x1xi32> to vector<16x128xi32>
    %76 = arith.cmpi eq, %75, %1 : vector<16x128xi32>
    %77 = arith.extui %76 : vector<16x128xi1> to vector<16x128xi32>
    %78 = arith.sitofp %77 : vector<16x128xi32> to vector<16x128xf32>
    %79 = arith.truncf %78 : vector<16x128xf32> to vector<16x128xbf16>
    %c0_15 = arith.constant 0 : index
    %c0_16 = arith.constant 0 : index
    %80 = vector.load %arg2[%c0_15, %c0_16] : memref<128x160xbf16, #tpu.memory_space<vmem>>, vector<128x160xbf16>
    %cst_17 = arith.constant dense<0.000000e+00> : vector<16x160xf32>
    %81 = tpu.matmul %79, %80, %cst_17 {dimension_numbers = #tpu.dot_dimension_numbers<[1], [0], [0], [1], [0, 0, 1, 1], [], []>} : vector<16x128xbf16>, vector<128x160xbf16>, vector<16x160xf32> -> vector<16x160xf32>
    %82 = vector.extract_strided_slice %81 {offsets = [0, 32], sizes = [16, 32], strides = [1, 1]} : vector<16x160xf32> to vector<16x32xf32>
    %83 = arith.addf %65, %82 : vector<16x32xf32>
    %84 = vector.extract_strided_slice %81 {offsets = [0, 64], sizes = [16, 32], strides = [1, 1]} : vector<16x160xf32> to vector<16x32xf32>
    %85 = arith.addf %67, %84 : vector<16x32xf32>
    %86 = vector.extract_strided_slice %81 {offsets = [0, 96], sizes = [16, 32], strides = [1, 1]} : vector<16x160xf32> to vector<16x32xf32>
    %87 = arith.addf %69, %86 : vector<16x32xf32>
    %88 = vector.extract_strided_slice %81 {offsets = [0, 128], sizes = [16, 32], strides = [1, 1]} : vector<16x160xf32> to vector<16x32xf32>
    %89 = arith.addf %71, %88 : vector<16x32xf32>
    %90 = vector.extract_strided_slice %0 {offsets = [0, 6], sizes = [16, 1], strides = [1, 1]} : vector<16x8xi32> to vector<16x1xi32>
    %91 = vector.broadcast %90 : vector<16x1xi32> to vector<16x128xi32>
    %92 = arith.cmpi eq, %91, %1 : vector<16x128xi32>
    %93 = arith.extui %92 : vector<16x128xi1> to vector<16x128xi32>
    %94 = arith.sitofp %93 : vector<16x128xi32> to vector<16x128xf32>
    %95 = arith.truncf %94 : vector<16x128xf32> to vector<16x128xbf16>
    %c0_18 = arith.constant 0 : index
    %c0_19 = arith.constant 0 : index
    %96 = vector.load %arg2[%c0_18, %c0_19] : memref<128x160xbf16, #tpu.memory_space<vmem>>, vector<128x160xbf16>
    %cst_20 = arith.constant dense<0.000000e+00> : vector<16x160xf32>
    %97 = tpu.matmul %95, %96, %cst_20 {dimension_numbers = #tpu.dot_dimension_numbers<[1], [0], [0], [1], [0, 0, 1, 1], [], []>} : vector<16x128xbf16>, vector<128x160xbf16>, vector<16x160xf32> -> vector<16x160xf32>
    %98 = vector.extract_strided_slice %97 {offsets = [0, 64], sizes = [16, 32], strides = [1, 1]} : vector<16x160xf32> to vector<16x32xf32>
    %99 = arith.addf %83, %98 : vector<16x32xf32>
    %100 = vector.extract_strided_slice %97 {offsets = [0, 96], sizes = [16, 32], strides = [1, 1]} : vector<16x160xf32> to vector<16x32xf32>
    %101 = arith.addf %85, %100 : vector<16x32xf32>
    %102 = vector.extract_strided_slice %97 {offsets = [0, 128], sizes = [16, 32], strides = [1, 1]} : vector<16x160xf32> to vector<16x32xf32>
    %103 = arith.addf %87, %102 : vector<16x32xf32>
    %104 = vector.extract_strided_slice %0 {offsets = [0, 7], sizes = [16, 1], strides = [1, 1]} : vector<16x8xi32> to vector<16x1xi32>
    %105 = vector.broadcast %104 : vector<16x1xi32> to vector<16x128xi32>
    %106 = arith.cmpi eq, %105, %1 : vector<16x128xi32>
    %107 = arith.extui %106 : vector<16x128xi1> to vector<16x128xi32>
    %108 = arith.sitofp %107 : vector<16x128xi32> to vector<16x128xf32>
    %109 = arith.truncf %108 : vector<16x128xf32> to vector<16x128xbf16>
    %c0_21 = arith.constant 0 : index
    %c0_22 = arith.constant 0 : index
    %110 = vector.load %arg2[%c0_21, %c0_22] : memref<128x160xbf16, #tpu.memory_space<vmem>>, vector<128x160xbf16>
    %cst_23 = arith.constant dense<0.000000e+00> : vector<16x160xf32>
    %111 = tpu.matmul %109, %110, %cst_23 {dimension_numbers = #tpu.dot_dimension_numbers<[1], [0], [0], [1], [0, 0, 1, 1], [], []>} : vector<16x128xbf16>, vector<128x160xbf16>, vector<16x160xf32> -> vector<16x160xf32>
    %112 = vector.extract_strided_slice %111 {offsets = [0, 96], sizes = [16, 32], strides = [1, 1]} : vector<16x160xf32> to vector<16x32xf32>
    %113 = arith.addf %99, %112 : vector<16x32xf32>
    %114 = vector.extract_strided_slice %111 {offsets = [0, 128], sizes = [16, 32], strides = [1, 1]} : vector<16x160xf32> to vector<16x32xf32>
    %115 = arith.addf %101, %114 : vector<16x32xf32>
    %116 = arith.maximumf %56, %73 : vector<16x32xf32>
    %117 = arith.maximumf %116, %89 : vector<16x32xf32>
    %118 = arith.maximumf %117, %103 : vector<16x32xf32>
    %119 = arith.maximumf %118, %115 : vector<16x32xf32>
    %120 = arith.maximumf %119, %113 : vector<16x32xf32>
    %c0_24 = arith.constant 0 : index
    %c0_25 = arith.constant 0 : index
    %121 = vector.load %arg3[%c0_24, %c0_25] : memref<1x32xf32, #tpu.memory_space<vmem>>, vector<1x32xf32>
    %122 = vector.broadcast %121 : vector<1x32xf32> to vector<16x32xf32>
    %123 = arith.addf %120, %122 : vector<16x32xf32>
    %cst_26 = arith.constant 0.000000e+00 : f32
    %124 = vector.broadcast %cst_26 : f32 to vector<16x32xf32>
    %125 = arith.maximumf %123, %124 : vector<16x32xf32>
    %126 = arith.truncf %125 : vector<16x32xf32> to vector<16x32xbf16>
    %c0_27 = arith.constant 0 : index
    %c0_28 = arith.constant 0 : index
    %127 = vector.load %arg4[%c0_27, %c0_28] : memref<32x64xbf16, #tpu.memory_space<vmem>>, vector<32x64xbf16>
    %cst_29 = arith.constant dense<0.000000e+00> : vector<16x64xf32>
    %128 = tpu.matmul %126, %127, %cst_29 {dimension_numbers = #tpu.dot_dimension_numbers<[1], [0], [0], [1], [0, 0, 1, 1], [], []>} : vector<16x32xbf16>, vector<32x64xbf16>, vector<16x64xf32> -> vector<16x64xf32>
    %c0_30 = arith.constant 0 : index
    %c0_31 = arith.constant 0 : index
    %129 = vector.load %arg5[%c0_30, %c0_31] : memref<1x64xf32, #tpu.memory_space<vmem>>, vector<1x64xf32>
    %130 = vector.broadcast %129 : vector<1x64xf32> to vector<16x64xf32>
    %131 = arith.addf %128, %130 : vector<16x64xf32>
    %132 = vector.extract_strided_slice %131 {offsets = [0, 0], sizes = [16, 32], strides = [1, 1]} : vector<16x64xf32> to vector<16x32xf32>
    %cst_32 = arith.constant 0.000000e+00 : f32
    %133 = vector.broadcast %cst_32 : f32 to vector<16x32xf32>
    %134 = arith.maximumf %132, %133 : vector<16x32xf32>
    %135 = vector.extract_strided_slice %131 {offsets = [0, 32], sizes = [16, 32], strides = [1, 1]} : vector<16x64xf32> to vector<16x32xf32>
    %cst_33 = arith.constant 0.000000e+00 : f32
    %136 = vector.broadcast %cst_33 : f32 to vector<16x32xf32>
    %137 = arith.subf %136, %135 : vector<16x32xf32>
    %138 = math.exp %137 : vector<16x32xf32>
    %cst_34 = arith.constant 1.000000e+00 : f32
    %139 = vector.broadcast %cst_34 : f32 to vector<16x32xf32>
    %140 = arith.addf %139, %138 : vector<16x32xf32>
    %141 = tpu.reciprocal %140 {approx = true} : vector<16x32xf32> -> vector<16x32xf32>
    %142 = arith.mulf %141, %134 : vector<16x32xf32>
    %cst_35 = arith.constant 1.000000e+00 : f32
    %143 = vector.broadcast %cst_35 : f32 to vector<16x32xf32>
    %144 = arith.subf %143, %141 : vector<16x32xf32>
    %145 = arith.mulf %144, %125 : vector<16x32xf32>
    %146 = arith.addf %142, %145 : vector<16x32xf32>
    %c0_36 = arith.constant 0 : index
    %c0_37 = arith.constant 0 : index
    %147 = vector.load %arg6[%c0_36, %c0_37] : memref<16x32xf32, #tpu.memory_space<vmem>>, vector<16x32xf32>
    tpu.vector_store %arg6[%c0_36, %c0_37], %146 {strides = array<i32>} : memref<16x32xf32, #tpu.memory_space<vmem>>, vector<16x32xf32>,
    return
  }
  func.func @transform_0(%arg0: i32) -> (i32, i32) {
    %c0_i32 = arith.constant 0 : i32
    %c0_i32_0 = arith.constant 0 : i32
    return %arg0, %c0_i32 : i32, i32
  }
  func.func @transform_1(%arg0: i32) -> (i32, i32) {
    %c0_i32 = arith.constant 0 : i32
    %c0_i32_0 = arith.constant 0 : i32
    %c0_i32_1 = arith.constant 0 : i32
    return %c0_i32, %c0_i32_0 : i32, i32
  }
  func.func @transform_2(%arg0: i32) -> (i32, i32) {
    %c0_i32 = arith.constant 0 : i32
    %c0_i32_0 = arith.constant 0 : i32
    %c0_i32_1 = arith.constant 0 : i32
    return %c0_i32, %c0_i32_0 : i32, i32
  }
  func.func @transform_3(%arg0: i32) -> (i32, i32) {
    %c0_i32 = arith.constant 0 : i32
    %c0_i32_0 = arith.constant 0 : i32
    %c0_i32_1 = arith.constant 0 : i32
    return %c0_i32, %c0_i32_0 : i32, i32
  }
  func.func @transform_4(%arg0: i32) -> (i32, i32) {
    %c0_i32 = arith.constant 0 : i32
    %c0_i32_0 = arith.constant 0 : i32
    %c0_i32_1 = arith.constant 0 : i32
    return %c0_i32, %c0_i32_0 : i32, i32
  }
  func.func @transform_5(%arg0: i32) -> (i32, i32) {
    %c0_i32 = arith.constant 0 : i32
    %c0_i32_0 = arith.constant 0 : i32
    return %arg0, %c0_i32 : i32, i32
  }
}

</mosaic_0001>

<bundles_post_ra>
// kernel: tpu_custom_call.1
= control target key start
LH: loop header
LB: loop body
LE: loop exit
PB: predicated region body
PF: predicated region fallthrough
CT: control target
= control target key end

     0   :  { %10 = vsyncpa [#allocation3], 0  ;;  %s1822_s0 = inlined_call_operand.vmem [shape: s32[32,8], index: 0, kind: input, shape index: {}]   ;;  %s1823_s1 = inlined_call_operand.vmem [shape: bf16[128,160], index: 1, kind: input, shape index: {}]   ;;  %s1824_s2 = inlined_call_operand.vmem [shape: f32[1,32], index: 2, kind: input, shape index: {}]   ;;  %s1825_s3 = inlined_call_operand.vmem [shape: bf16[32,64], index: 3, kind: input, shape index: {}]   ;;  %s1826_s4 = inlined_call_operand.vmem [shape: f32[1,64], index: 4, kind: input, shape index: {}]   ;;  %s1827_s5 = inlined_call_operand.hbm [shape: f32[32,32], index: 5, kind: output, shape index: {}]  }
   0x1   :  { %12 = vsyncpa [#allocation3 + $0x1], 0  ;;  %s1314_s18 = smov 0   ;;  %s1316_s19 = smov 0  }
   0x2   :  { %s1318_s20 = smov 0   ;;  %s1320_s21 = smov 0  }
   0x3 LB: > { %s1335_s22 = sadd.s32 4294967295, %s1268_s21   ;;  %s983_s23 = sadd.s32 4294967294, %s1268_s21   ;;  %s1268_s21 = sphi %s1320_s21, %s1841_s21   ;;  %s1264_s20 = sphi %s1318_s20, %s1840_s20   ;;  %s1260_s19 = sphi %s1316_s19, %s1839_s19   ;;  %s1256_s18 = sphi %s1314_s18, %s1838_s18  }
   0x4   : > { %s1339_s24 = sadd.s32 1, %s1268_s21   ;;  %s135_s25 = sadd.s32 1, %s1264_s20 }
   0x5   : > { %s132_s26 = ssub.s32 %s1268_s21, %s1339_s24  ;;  %p145_p0 = scmp.ne.s32.totalorder %s1264_s20, %s1260_s19 }
   0x6   : > { %p133_p1 = scmp.eq.s32.totalorder %s132_s26, 0  ;;  %p146_p2 = scmp.eq.s32.totalorder %s1335_s22, 1 }
   0x7   : > { %p151_p3 = scmp.ne.s32.totalorder %s1260_s19, %s1256_s18  ;;  %p152_p4 = scmp.eq.s32.totalorder %s983_s23, 1 }
   0x8   : > { %s1350_s27 = scalar_select %p133_p1, %s1264_s20, %s135_s25  }
   0x9   : > { %p1352_p5 = por %p146_p2, %p145_p0  ;;  %p1356_p6 = por %p152_p4, %p151_p3 }
   0xa   : > { %p986_p7 = scmp.ge.s32.totalorder %s1268_s21, 1  ;;  %p191_p8 = scmp.lt.s32.totalorder %s1268_s21, 3 }
   0xc   : > { %p192_p9 = pnand %p986_p7, %p191_p8 }
   0xd   : > { %s988_s30 = sshll.u32 (!%p192_p9), %s1335_s22, 1  ;;  %s1279_s10 = smov (!%p192_p9), 96  }
   0xe   : > { %195 = sbr.rel (%p192_p9) target bundleno = 1077 (0x435), region = 40  ;;  %p220_p10 = scmp.lt.s32.totalorder (!%p192_p9), %s988_s30, 3 }
   0xf   : > { %s1280_s11 = smov (!%p192_p9), 64   ;;  %s1281_s12 = smov (!%p192_p9), 32  }
  0x10   : > { %s1128_s7 = sshll.u32 (!%p192_p9), %s1335_s22, 4  ;;  %s1226_s23 = scalar_lea.hbm (!%p192_p9), %s1827_s5, 32 }
  0x13   : > { %v1270_v0 = vmov 3   ;;  %v1271_v1 = vmov 1   ;;  %v1272_v2 = vmov 5   ;;  %s1843_s30 = smov (!%p220_p10, %s988_s30), 3  ;;  %v1022_v5 = vld [vmem:[%s1823_s1 + $0x70] sm:$0xf]  ;;  %v229_v61 = vlaneseq }
  0x14   : > { %1182 = vset.pattern.permute.xlu0 %v1270_v0  ;;  %1183 = vset.pattern.permute.xlu1 %v1271_v1  ;;  %s989_s6 = sshll.u32 %s1843_s30, 3  ;;  %v1125_v6 = vld [vmem:[%s1823_s1 + $0x74] sm:$0xf0]  ;;  %v1018_v7 = vld [vmem:[%s1823_s1 + $0x60] sm:$0xf]  ;;  %v1273_v11 = vmov 4  }
  0x15   : > { %1184 = vset.pattern.permute.xlu2 %v1272_v2  ;;  %s223_s9 = scalar_lea.vmem %s1822_s0, %s989_s6  ;;  %v1385_v8 = vor.u32 %v1125_v6, %v1022_v5  ;;  %v1123_v9 = vld [vmem:[%s1823_s1 + $0x64] sm:$0xf0]  ;;  %v1014_v12 = vld [vmem:[%s1823_s1 + $0x50] sm:$0xf]  ;;  %v1121_v13 = vld [vmem:[%s1823_s1 + $0x54] sm:$0xf0] }
  0x16   : > { %v1366_v3 = vld [vmem:[%s223_s9] sm:$0xff]  ;;  %v1371_v4 = vld [vmem:[%s223_s9 + $0x8] sm:$0xff]  ;;  %v1392_v10 = vor.u32 %v1123_v9, %v1018_v7  ;;  %v1274_v14 = vmov 2   ;;  %v1405_v15 = vor.u32 %v1121_v13, %v1014_v12  ;;  %v1275_v19 = vmov 0   ;;  %v1006_v20 = vld [vmem:[%s1823_s1 + $0x30] sm:$0xf] }
  0x17   : > { %323 = vperm.xlu1 %1183, %v1366_v3   ;;  %405 = vperm.xlu0 %1182, %v1366_v3   ;;  %v1010_v16 = vld [vmem:[%s1823_s1 + $0x40] sm:$0xf]  ;;  %v1119_v17 = vld [vmem:[%s1823_s1 + $0x44] sm:$0xf0]  ;;  %v1117_v21 = vld [vmem:[%s1823_s1 + $0x34] sm:$0xf0] }
  0x18   : > { %583 = vperm.xlu2 %1184, %v1366_v3   ;;  %335 = vmatpush.bf16.msra.mxu1 %v1385_v8  ;;  %v1418_v18 = vor.u32 %v1119_v17, %v1010_v16  ;;  %v1432_v22 = vor.u32 %v1117_v21, %v1006_v20  ;;  %v1002_v23 = vld [vmem:[%s1823_s1 + $0x20] sm:$0xf]  ;;  %v1115_v24 = vld [vmem:[%s1823_s1 + $0x24] sm:$0xf0]  ;;  %v998_v26 = vld [vmem:[%s1823_s1 + $0x10] sm:$0xf] }
  0x19   : > { %449 = vmatpush.bf16.msra.mxu3 %v1385_v8  ;;  %308 = vmatpush.bf16.msra.mxu0 %v1385_v8  ;;  %v1444_v25 = vor.u32 %v1115_v24, %v1002_v23  ;;  %v1113_v27 = vld [vmem:[%s1823_s1 + $0x14] sm:$0xf0]  ;;  %v1276_v28 = vmov 7   ;;  %v994_v30 = vld [vmem:[%s1823_s1] sm:$0xf]  ;;  %v1277_v35 = vmov 6  }
  0x1a   : > { %372 = vmatpush.bf16.msra.mxu2 %v1385_v8  ;;  %v1457_v29 = vor.u32 %v1113_v27, %v998_v26  ;;  %v1111_v31 = vld [vmem:[%s1823_s1 + $0x4] sm:$0xf0]  ;;  %v1124_v33 = vld [vmem:[%s1823_s1 + $0x74] sm:$0xf]  ;;  %v1064_v34 = vld [vmem:[%s1823_s1 + $0x78] sm:$0xf0] }
  0x1b   : > { %v1470_v32 = vor.u32 %v1111_v31, %v994_v30  ;;  %v1483_v36 = vor.u32 %v1124_v33, %v1064_v34  ;;  %v1122_v37 = vld [vmem:[%s1823_s1 + $0x64] sm:$0xf]  ;;  %v1060_v38 = vld [vmem:[%s1823_s1 + $0x68] sm:$0xf0]  ;;  %v1120_v39 = vld [vmem:[%s1823_s1 + $0x54] sm:$0xf] }
  0x1c   : > { %336 = vmatpush.bf16.msra.mxu1 %v1392_v10  ;;  %v1517_v40 = vor.u32 %v1122_v37, %v1060_v38  ;;  %v1056_v41 = vld [vmem:[%s1823_s1 + $0x58] sm:$0xf0]  ;;  %v1118_v43 = vld [vmem:[%s1823_s1 + $0x44] sm:$0xf]  ;;  %v1052_v44 = vld [vmem:[%s1823_s1 + $0x48] sm:$0xf0] }
  0x1d   : > { %450 = vmatpush.bf16.msra.mxu3 %v1392_v10  ;;  %309 = vmatpush.bf16.msra.mxu0 %v1392_v10  ;;  %v1523_v42 = vor.u32 %v1120_v39, %v1056_v41  ;;  %v1534_v45 = vor.u32 %v1118_v43, %v1052_v44  ;;  %v1116_v46 = vld [vmem:[%s1823_s1 + $0x34] sm:$0xf]  ;;  %v1048_v47 = vld [vmem:[%s1823_s1 + $0x38] sm:$0xf0]  ;;  %v1114_v49 = vld [vmem:[%s1823_s1 + $0x24] sm:$0xf] }
  0x1e   : > { %373 = vmatpush.bf16.msra.mxu2 %v1392_v10  ;;  %v1543_v48 = vor.u32 %v1116_v46, %v1048_v47  ;;  %v1044_v50 = vld [vmem:[%s1823_s1 + $0x28] sm:$0xf0]  ;;  %v1112_v52 = vld [vmem:[%s1823_s1 + $0x14] sm:$0xf]  ;;  %v1040_v53 = vld [vmem:[%s1823_s1 + $0x18] sm:$0xf0] }
  0x1f   : > { %326 = vperm.xlu1 %1183, %v1371_v4   ;;  %408 = vperm.xlu0 %1182, %v1371_v4   ;;  %v1554_v51 = vor.u32 %v1114_v49, %v1044_v50  ;;  %v1563_v54 = vor.u32 %v1112_v52, %v1040_v53  ;;  %v1110_v56 = vld [vmem:[%s1823_s1 + $0x4] sm:$0xf]  ;;  %v1036_v57 = vld [vmem:[%s1823_s1 + $0x8] sm:$0xf0]  ;;  %v1578_v63 = vand.u32 127, %v229_v61  ;;  %s216_s30 = sand.u32 1, %s1260_s19  }
  0x20   : > { %586 = vperm.xlu2 %1184, %v1371_v4   ;;  %337 = vmatpush.bf16.msra.mxu1 %v1405_v15  ;;  %v1574_v58 = vor.u32 %v1110_v56, %v1036_v57  ;;  %s987_s6 = sshll.u32 %s216_s30, 4 }
  0x21   : > { %451 = vmatpush.bf16.msra.mxu3 %v1405_v15  ;;  %310 = vmatpush.bf16.msra.mxu0 %v1405_v15  ;;  %s218_s8 = scalar_lea.vmem [#allocation2], %s987_s6 }
  0x22   : > { %374 = vmatpush.bf16.msra.mxu2 %v1405_v15  ;;  %s918_s13 = sshll.u32 %s218_s8, 4  ;;  %s919_s13 = int_to_ptr.vmem [resolvable:$true] %s918_s13 }
  0x24   : > { %338 = vmatpush.bf16.msra.mxu1 %v1418_v18 }
  0x25   : > { %452 = vmatpush.bf16.msra.mxu3 %v1418_v18  ;;  %311 = vmatpush.bf16.msra.mxu0 %v1418_v18 }
  0x26   : > { %375 = vmatpush.bf16.msra.mxu2 %v1418_v18 }
  0x27   : > { %1186 = vset.pattern.permute.xlu1 %v1273_v11  ;;  %1185 = vset.pattern.permute.xlu0 %v1273_v11 }
  0x28   : > { %517 = vperm.xlu1 %1186, %v1371_v4   ;;  %514 = vperm.xlu0 %1185, %v1366_v3  }
  0x29   : > { %1187 = vset.pattern.permute.xlu2 %v1274_v14  ;;  %339 = vmatpush.bf16.msra.mxu1 %v1432_v22 }
  0x2a   : > { %360 = vperm.xlu2 %1187, %v1366_v3   ;;  %453 = vmatpush.bf16.msra.mxu3 %v1432_v22 }
  0x2b   : > { %312 = vmatpush.bf16.msra.mxu0 %v1432_v22  ;;  %376 = vmatpush.bf16.msra.mxu2 %v1432_v22 }
  0x2d   : > { %340 = vmatpush.bf16.msra.mxu1 %v1444_v25 }
  0x2e   : > { %454 = vmatpush.bf16.msra.mxu3 %v1444_v25 }
  0x2f   : > { %313 = vmatpush.bf16.msra.mxu0 %v1444_v25  ;;  %377 = vmatpush.bf16.msra.mxu2 %v1444_v25 }
  0x30   : > { %1188 = vset.pattern.permute.xlu1 %v1274_v14  ;;  %1190 = vset.pattern.permute.xlu0 %v1275_v19 }
  0x31   : > { %363 = vperm.xlu1 %1188, %v1371_v4   ;;  %235 = vperm.xlu0 %1190, %v1371_v4  }
  0x32   : > { %1189 = vset.pattern.permute.xlu2 %v1275_v19  ;;  %341 = vmatpush.bf16.msra.mxu1 %v1457_v29 }
  0x33   : > { %232 = vperm.xlu2 %1189, %v1366_v3   ;;  %455 = vmatpush.bf16.msra.mxu3 %v1457_v29 }
  0x34   : > { %314 = vmatpush.bf16.msra.mxu0 %v1457_v29  ;;  %378 = vmatpush.bf16.msra.mxu2 %v1457_v29 }
  0x36   : > { %342 = vmatpush.bf16.msra.mxu1 %v1470_v32 }
  0x37   : > { %456 = vmatpush.bf16.msra.mxu3 %v1470_v32 }
  0x38   : > { %315 = vmatpush.bf16.msra.mxu0 %v1470_v32  ;;  %379 = vmatpush.bf16.msra.mxu2 %v1470_v32 }
  0x39   : > { %1191 = vset.pattern.permute.xlu1 %v1276_v28  ;;  %1195 = vset.pattern.permute.xlu0 %v1276_v28 }
  0x3a   : > { %713 = vperm.xlu1 %1191, %v1366_v3   ;;  %526 = vmatpush.bf16.msrb.mxu1 %v1385_v8 }
  0x3b   : > { %1192 = vset.pattern.permute.xlu2 %v1276_v28  ;;  %595 = vmatpush.bf16.msrb.mxu3 %v1385_v8 }
  0x3c   : > { %716 = vperm.xlu2 %1192, %v1371_v4   ;;  %463 = vmatpush.bf16.msrb.mxu0 %v1483_v36 }
  0x3d   : > { %540 = vmatpush.bf16.msrb.mxu2 %v1483_v36 }
  0x3e   : > { %527 = vmatpush.bf16.msrb.mxu1 %v1392_v10 }
  0x3f   : > { %596 = vmatpush.bf16.msrb.mxu3 %v1392_v10 }
  0x40   : > { %464 = vmatpush.bf16.msrb.mxu0 %v1517_v40 }
  0x41   : > { %541 = vmatpush.bf16.msrb.mxu2 %v1517_v40 }
  0x42   : > { %1193 = vset.pattern.permute.xlu1 %v1277_v35  ;;  %528 = vmatpush.bf16.msrb.mxu1 %v1405_v15 }
  0x43   : > { %652 = vperm.xlu1 %1193, %v1366_v3   ;;  %597 = vmatpush.bf16.msrb.mxu3 %v1405_v15  ;;  %v1278_v3 = vmov 1.0|1.0  }
  0x44   : > { %1194 = vset.pattern.permute.xlu2 %v1277_v35  ;;  %465 = vmatpush.bf16.msrb.mxu0 %v1523_v42 }
  0x45   : > { %655 = vperm.xlu2 %1194, %v1371_v4   ;;  %542 = vmatpush.bf16.msrb.mxu2 %v1523_v42 }
  0x46   : > { %529 = vmatpush.bf16.msrb.mxu1 %v1418_v18 }
  0x47   : > { %598 = vmatpush.bf16.msrb.mxu3 %v1418_v18 }
  0x48   : > { %466 = vmatpush.bf16.msrb.mxu0 %v1534_v45 }
  0x49   : > { %543 = vmatpush.bf16.msrb.mxu2 %v1534_v45 }
  0x4a   : > { %530 = vmatpush.bf16.msrb.mxu1 %v1432_v22 }
  0x4b   : > { %599 = vmatpush.bf16.msrb.mxu3 %v1432_v22 }
  0x4c   : > { %467 = vmatpush.bf16.msrb.mxu0 %v1543_v48 }
  0x4d   : > { %544 = vmatpush.bf16.msrb.mxu2 %v1543_v48 }
  0x4e   : > { %531 = vmatpush.bf16.msrb.mxu1 %v1444_v25 }
  0x4f   : > { %600 = vmatpush.bf16.msrb.mxu3 %v1444_v25 }
  0x50   : > { %468 = vmatpush.bf16.msrb.mxu0 %v1554_v51 }
  0x51   : > { %545 = vmatpush.bf16.msrb.mxu2 %v1554_v51 }
  0x52   : > { %532 = vmatpush.bf16.msrb.mxu1 %v1457_v29 }
  0x53   : > { %601 = vmatpush.bf16.msrb.mxu3 %v1457_v29 }
  0x54   : > { %469 = vmatpush.bf16.msrb.mxu0 %v1563_v54 }
  0x55   : > { %546 = vmatpush.bf16.msrb.mxu2 %v1563_v54 }
  0x56   : > { %533 = vmatpush.bf16.msrb.mxu1 %v1470_v32 }
  0x57   : > { %602 = vmatpush.bf16.msrb.mxu3 %v1470_v32 }
  0x58   : > { %470 = vmatpush.bf16.msrb.mxu0 %v1574_v58 }
  0x59   : > { %547 = vmatpush.bf16.msrb.mxu2 %v1574_v58 }
  0x72   : > { %v584_v55 = vpop.permute.xlu2 %583 }
  0x73   : > { %vm588_vm8 = vcmp.eq.s32.totalorder %v584_v55, %v1578_v63 }
  0x7a   : > { %v587_v62 = vpop.permute.xlu2 %586 }
  0x7b   : > { %vm589_vm9 = vcmp.eq.s32.totalorder %v587_v62, %v1578_v63 }
  0x7c   : > { %vm1610_vm13 = vmpackc.low %vm589_vm9, %vm588_vm8 }
  0x84   : > { %v361_v4 = vpop.permute.xlu2 %360 }
  0x85   : > { %vm365_vm10 = vcmp.eq.s32.totalorder %v361_v4, %v1578_v63 }
  0x89   : > { %v324_v59 = vpop.permute.xlu1 %323  ;;  %v406_v60 = vpop.permute.xlu0 %405 }
  0x8a   : > { %vm410_vm0 = vcmp.eq.s32.totalorder %v406_v60, %v1578_v63  ;;  %vm328_vm1 = vcmp.eq.s32.totalorder %v324_v59, %v1578_v63 }
  0x8d   : > { %v233_v7 = vpop.permute.xlu2 %232 }
  0x8e   : > { %vm237_vm12 = vcmp.eq.s32.totalorder %v233_v7, %v1578_v63 }
  0x91   : > { %v327_v0 = vpop.permute.xlu1 %326  ;;  %v409_v1 = vpop.permute.xlu0 %408 }
  0x92   : > { %vm329_vm2 = vcmp.eq.s32.totalorder %v327_v0, %v1578_v63  ;;  %vm411_vm3 = vcmp.eq.s32.totalorder %v409_v1, %v1578_v63 }
  0x93   : > { %vm1028_vm4 = vmpackc.low %vm329_vm2, %vm328_vm1 }
  0x94   : > { %vm1584_vm5 = vmpackc.low %vm411_vm3, %vm410_vm0  ;;  %1029 = vmatmul.msk.bf16.vlgmr.msra.gmra.mxu1 %vm1028_vm4, %v1278_v3 }
  0x95   : > { %1069 = vmatmul.msk.bf16.vlgmr.msra.gmra.mxu3 %vm1584_vm5, %v1278_v3  ;;  %664 = vmatpush.bf16.msra.mxu1 %v1385_v8 }
  0x96   : > { %725 = vmatpush.bf16.msra.mxu3 %v1385_v8  ;;  %v717_v12 = vpop.permute.xlu2 %716 }
  0x97   : > { %vm719_vm2 = vcmp.eq.s32.totalorder %v717_v12, %v1578_v63 }
  0x99   : > { %665 = vmatpush.bf16.msra.mxu1 %v1392_v10 }
  0x9a   : > { %v518_v5 = vpop.permute.xlu1 %517  ;;  %v515_v6 = vpop.permute.xlu0 %514  ;;  %726 = vmatpush.bf16.msra.mxu3 %v1392_v10 }
  0x9b   : > { %vm520_vm6 = vcmp.eq.s32.totalorder %v518_v5, %v1578_v63  ;;  %vm519_vm7 = vcmp.eq.s32.totalorder %v515_v6, %v1578_v63 }
  0x9c   : > { %vm1605_vm11 = vmpackc.low %vm520_vm6, %vm519_vm7 }
  0x9d   : > { %666 = vmatpush.bf16.msra.mxu1 %v1405_v15 }
  0x9e   : > { %727 = vmatpush.bf16.msra.mxu3 %v1405_v15 }
  0x9f   : > { %v656_v15 = vpop.permute.xlu2 %655 }
  0xa0   : > { %vm658_vm6 = vcmp.eq.s32.totalorder %v656_v15, %v1578_v63 }
  0xa1   : > { %667 = vmatpush.bf16.msra.mxu1 %v1418_v18 }
  0xa2   : > { %728 = vmatpush.bf16.msra.mxu3 %v1418_v18 }
  0xa3   : > { %v364_v9 = vpop.permute.xlu1 %363  ;;  %v236_v10 = vpop.permute.xlu0 %235 }
  0xa4   : > { %vm366_vm14 = vcmp.eq.s32.totalorder %v364_v9, %v1578_v63  ;;  %vm238_vm15 = vcmp.eq.s32.totalorder %v236_v10, %v1578_v63  ;;  %1075 = vmatmul.msk.bf16.vlgmr.msrb.gmra.mxu1 %vm1605_vm11, %v1278_v3 }
  0xa5   : > { %vm1032_vm0 = vmpackc.low %vm366_vm14, %vm365_vm10  ;;  %1081 = vmatmul.msk.bf16.vlgmr.msrb.gmra.mxu3 %vm1610_vm13, %v1278_v3  ;;  %668 = vmatpush.bf16.msra.mxu1 %v1432_v22 }
  0xa6   : > { %vm1024_vm1 = vmpackc.low %vm238_vm15, %vm237_vm12  ;;  %1033 = vmatmul.msk.bf16.vlgmr.msra.gmra.mxu2 %vm1032_vm0, %v1278_v3  ;;  %729 = vmatpush.bf16.msra.mxu3 %v1432_v22 }
  0xa7   : > { %1025 = vmatmul.msk.bf16.vlgmr.msra.gmra.mxu0 %vm1024_vm1, %v1278_v3  ;;  %678 = vmatpush.bf16.msra.mxu2 %v1483_v36 }
  0xa8   : > { %609 = vmatpush.bf16.msra.mxu0 %v1483_v36 }
  0xa9   : > { %669 = vmatpush.bf16.msra.mxu1 %v1444_v25 }
  0xaa   : > { %730 = vmatpush.bf16.msra.mxu3 %v1444_v25 }
  0xab   : > { %679 = vmatpush.bf16.msra.mxu2 %v1517_v40 }
  0xac   : > { %610 = vmatpush.bf16.msra.mxu0 %v1517_v40  ;;  %v714_v13 = vpop.permute.xlu1 %713 }
  0xad   : > { %670 = vmatpush.bf16.msra.mxu1 %v1457_v29  ;;  %vm718_vm3 = vcmp.eq.s32.totalorder %v714_v13, %v1578_v63 }
  0xae   : > { %731 = vmatpush.bf16.msra.mxu3 %v1457_v29  ;;  %vm1641_vm4 = vmpackc.low %vm719_vm2, %vm718_vm3 }
  0xaf   : > { %680 = vmatpush.bf16.msra.mxu2 %v1523_v42 }
  0xb0   : > { %611 = vmatpush.bf16.msra.mxu0 %v1523_v42 }
  0xb1   : > { %671 = vmatpush.bf16.msra.mxu1 %v1470_v32 }
  0xb2   : > { %732 = vmatpush.bf16.msra.mxu3 %v1470_v32 }
  0xb3   : > { %681 = vmatpush.bf16.msra.mxu2 %v1534_v45 }
  0xb4   : > { %612 = vmatpush.bf16.msra.mxu0 %v1534_v45 }
  0xb5   : > { %1093 = vmatmul.msk.bf16.vlgmr.msra.gmra.mxu3 %vm1641_vm4, %v1278_v3  ;;  %v653_v16 = vpop.permute.xlu1 %652 }
  0xb6   : > { %1077 = vmatmul.msk.bf16.vlgmr.msrb.gmra.mxu2 %vm1605_vm11, %v1278_v3  ;;  %vm657_vm7 = vcmp.eq.s32.totalorder %v653_v16, %v1578_v63 }
  0xb7   : > { %1071 = vmatmul.msk.bf16.vlgmr.msrb.gmra.mxu0 %vm1584_vm5, %v1278_v3  ;;  %682 = vmatpush.bf16.msra.mxu2 %v1543_v48  ;;  %vm1086_vm8 = vmpackc.low %vm658_vm6, %vm657_vm7  ;;  %vm849_vm5 = vcmask 261120  }
  0xb8   : > { %613 = vmatpush.bf16.msra.mxu0 %v1543_v48  ;;  %1087 = vmatmul.msk.bf16.vlgmr.msra.gmra.mxu1 %vm1086_vm8, %v1278_v3 }
  0xbb   : > { %683 = vmatpush.bf16.msra.mxu2 %v1554_v51 }
  0xbc   : > { %614 = vmatpush.bf16.msra.mxu0 %v1554_v51 }
  0xbf   : > { %684 = vmatpush.bf16.msra.mxu2 %v1563_v54 }
  0xc0   : > { %615 = vmatpush.bf16.msra.mxu0 %v1563_v54 }
  0xc3   : > { %685 = vmatpush.bf16.msra.mxu2 %v1574_v58 }
  0xc4   : > { %616 = vmatpush.bf16.msra.mxu0 %v1574_v58 }
  0xc6   : > { %1089 = vmatmul.msk.bf16.vlgmr.msra.gmra.mxu2 %vm1086_vm8, %v1278_v3 }
  0xc7   : > { %1083 = vmatmul.msk.bf16.vlgmr.msra.gmra.mxu0 %vm1610_vm13, %v1278_v3 }
  0xc8   : > { %739 = vmatpush.bf16.msrb.mxu0 %v1483_v36 }
  0xcc   : > { %740 = vmatpush.bf16.msrb.mxu0 %v1517_v40 }
  0xd0   : > { %741 = vmatpush.bf16.msrb.mxu0 %v1523_v42 }
  0xd4   : > { %742 = vmatpush.bf16.msrb.mxu0 %v1534_v45 }
  0xd8   : > { %743 = vmatpush.bf16.msrb.mxu0 %v1543_v48 }
  0xdc   : > { %744 = vmatpush.bf16.msrb.mxu0 %v1554_v51 }
  0xe0   : > { %745 = vmatpush.bf16.msrb.mxu0 %v1563_v54 }
  0xe4   : > { %746 = vmatpush.bf16.msrb.mxu0 %v1574_v58 }
  0xe7   : > { %1095 = vmatmul.msk.bf16.vlgmr.msrb.gmra.mxu0 %vm1641_vm4, %v1278_v3 }
 0x111   : > { %v1681_v17 = vpop.f32.mrf.mxu1 }
 0x112   : > { %351 = vrot.lane.b32.xlu0 %v1681_v17, %s1279_s10 }
 0x118   : > { %v1685_v18 = vpop.f32.mrf.mxu3 }
 0x119   : > { %v346_v21 = vpop.f32.mrf.mxu1 }
 0x11a   : > { %479 = vrot.lane.b32.xlu0 %v1685_v18, %s1279_s10 }
 0x120   : > { %v1703_v22 = vpop.f32.mrf.mxu3 }
 0x121   : > { %v1710_v23 = vpop.f32.mrf.mxu1 }
 0x124   : > { %v317_v27 = vpop.f32.mrf.mxu0 }
 0x128   : > { %v604_v24 = vpop.f32.mrf.mxu3 }
 0x129   : > { %v1689_v19 = vpop.f32.mrf.mxu2  ;;  %v1723_v25 = vpop.f32.mrf.mxu1 }
 0x12a   : > { %396 = vrot.lane.b32.xlu1 %v1689_v19, %s1280_s11  ;;  %388 = vrot.lane.b32.xlu2 %v1689_v19, %s1279_s10 }
 0x12c   : > { %v319_v29 = vpop.f32.mrf.mxu0 }
 0x130   : > { %v606_v26 = vpop.f32.mrf.mxu3 }
 0x131   : > { %v1695_v20 = vpop.f32.mrf.mxu2 }
 0x132   : > { %495 = vrot.lane.b32.xlu1 %v1685_v18, %s1281_s12  ;;  %487 = vrot.lane.b32.xlu2 %v1685_v18, %s1280_s11 }
 0x133   : > { %390 = vrot.lane.b32.xlu0 %v1695_v20, %s1279_s10 }
 0x134   : > { %v472_v32 = vpop.f32.mrf.mxu0 }
 0x135   : > { %v673_v28 = vpop.f32.mrf.mxu1 }
 0x138   : > { %v734_v30 = vpop.f32.mrf.mxu3 }
 0x139   : > { %v549_v48 = vpop.f32.mrf.mxu2 }
 0x13a   : > { %353 = vrot.lane.b32.xlu1 %v346_v21, %s1279_s10  ;;  %398 = vrot.lane.b32.xlu2 %v1695_v20, %s1280_s11 }
 0x13b   : > { %489 = vrot.lane.b32.xlu0 %v1703_v22, %s1280_s11 }
 0x13c   : > { %v474_v34 = vpop.f32.mrf.mxu0 }
 0x13d   : > { %v675_v31 = vpop.f32.mrf.mxu1 }
 0x140   : > { %v736_v33 = vpop.f32.mrf.mxu3 }
 0x141   : > { %v551_v58 = vpop.f32.mrf.mxu2 }
 0x142   : > { %497 = vrot.lane.b32.xlu2 %v1703_v22, %s1281_s12  ;;  %481 = vrot.lane.b32.xlu1 %v1703_v22, %s1279_s10 }
 0x143   : > { %556 = vrot.lane.b32.xlu0 %v1710_v23, %s1279_s10 }
 0x144   : > { %v618_v50 = vpop.f32.mrf.mxu0 }
 0x149   : > { %v687_v7 = vpop.f32.mrf.mxu2 }
 0x14a   : > { %572 = vrot.lane.b32.xlu1 %v1710_v23, %s1281_s12  ;;  %564 = vrot.lane.b32.xlu2 %v1710_v23, %s1280_s11 }
 0x14b   : > { %633 = vrot.lane.b32.xlu0 %v604_v24, %s1280_s11 }
 0x14c   : > { %v620_v3 = vpop.f32.mrf.mxu0 }
 0x152   : > { %625 = vrot.lane.b32.xlu1 %v604_v24, %s1279_s10  ;;  %641 = vrot.lane.b32.xlu2 %v604_v24, %s1281_s12 }
 0x153   : > { %566 = vrot.lane.b32.xlu0 %v1723_v25, %s1280_s11 }
 0x15a   : > { %574 = vrot.lane.b32.xlu2 %v1723_v25, %s1281_s12  ;;  %558 = vrot.lane.b32.xlu1 %v1723_v25, %s1279_s10 }
 0x15b   : > { %643 = vrot.lane.b32.xlu0 %v606_v26, %s1281_s12 }
 0x162   : > { %627 = vrot.lane.b32.xlu2 %v606_v26, %s1279_s10  ;;  %635 = vrot.lane.b32.xlu1 %v606_v26, %s1280_s11 }
 0x163   : > { %702 = vrot.lane.b32.xlu0 %v673_v28, %s1281_s12 }
 0x16a   : > { %694 = vrot.lane.b32.xlu2 %v673_v28, %s1280_s11  ;;  %704 = vrot.lane.b32.xlu1 %v675_v31, %s1281_s12 }
 0x16b   : > { %696 = vrot.lane.b32.xlu0 %v675_v31, %s1280_s11 }
 0x172   : > { %757 = vrot.lane.b32.xlu2 %v736_v33, %s1281_s12  ;;  %755 = vrot.lane.b32.xlu1 %v734_v30, %s1281_s12  ;;  %v748_v30 = vpop.f32.mrf.mxu0 }
 0x173   : > { %505 = vrot.lane.b32.xlu0 %v472_v32, %s1281_s12 }
 0x17a   : > { %507 = vrot.lane.b32.xlu1 %v474_v34, %s1281_s12 }
 0x184   : > { %v389_v35 = vpop.permute.xlu2 %388  ;;  %v352_v37 = vpop.permute.xlu0 %351 }
 0x185   : > { %v357_v42 = vadd.f32 %v352_v37, %v317_v27  ;;  %v394_v6 = vadd.f32 %v389_v35, %v1681_v17  ;;  %v689_v27 = vpop.f32.mrf.mxu2 }
 0x18c   : > { %v488_v36 = vpop.permute.xlu2 %487  ;;  %v480_v41 = vpop.permute.xlu0 %479 }
 0x18d   : > { %v485_v59 = vadd.f32 %v480_v41, %v1689_v19  ;;  %v493_v8 = vadd.f32 %v488_v36, %v394_v6 }
 0x194   : > { %v399_v38 = vpop.permute.xlu2 %398 }
 0x19c   : > { %v397_v39 = vpop.permute.xlu1 %396  ;;  %v498_v40 = vpop.permute.xlu2 %497 }
 0x19d   : > { %v1744_v43 = vadd.f32 %v397_v39, %v357_v42 }
 0x1a4   : > { %v496_v44 = vpop.permute.xlu1 %495  ;;  %v565_v45 = vpop.permute.xlu2 %564 }
 0x1a5   : > { %v501_v46 = vadd.f32 %v496_v44, %v1744_v43  ;;  %v391_v47 = vpop.permute.xlu0 %390  ;;  %v570_v0 = vadd.f32 %v565_v45, %v485_v59 }
 0x1a6   : > { %v395_v56 = vadd.f32 %v391_v47, %v346_v21 }
 0x1a7   : > { %v580_v49 = vadd.f32 %v549_v48, %v501_v46 }
 0x1a9   : > { %767 = vrot.lane.b32.xlu2 %v580_v49, %s1281_s12 }
 0x1ac   : > { %v354_v51 = vpop.permute.xlu1 %353  ;;  %v642_v52 = vpop.permute.xlu2 %641 }
 0x1ad   : > { %v358_v53 = vadd.f32 %v354_v51, %v319_v29  ;;  %v490_v54 = vpop.permute.xlu0 %489  ;;  %v647_v4 = vadd.f32 %v642_v52, %v570_v0 }
 0x1ae   : > { %v494_v60 = vadd.f32 %v490_v54, %v395_v56  ;;  %v1126_v54 = vld [vmem:[%s1825_s3] sm:$0xff] }
 0x1af   : > { %v1748_v55 = vadd.f32 %v399_v38, %v358_v53  ;;  %v710_v9 = vadd.f32 %v687_v7, %v647_v4  ;;  %v1127_v53 = vld [vmem:[%s1825_s3 + $0x8] sm:$0xff] }
 0x1b0   : > { %859 = vmatpush.bf16.msrb.mxu1 %v1127_v53 }
 0x1b1   : > { %v502_v57 = vadd.f32 %v498_v40, %v1748_v55 }
 0x1b3   : > { %v581_v61 = vadd.f32 %v551_v58, %v502_v57 }
 0x1b4   : > { %v482_v62 = vpop.permute.xlu1 %481  ;;  %v575_v63 = vpop.permute.xlu2 %574  ;;  %860 = vmatpush.bf16.msrb.mxu1 %v1126_v54 }
 0x1b5   : > { %v579_v1 = vadd.f32 %v575_v63, %v494_v60  ;;  %v557_v2 = vpop.permute.xlu0 %556  ;;  %769 = vrot.lane.b32.xlu0 %v581_v61, %s1281_s12  ;;  %v486_v16 = vadd.f32 %v482_v62, %v1695_v20 }
 0x1b6   : > { %v562_v29 = vadd.f32 %v557_v2, %v1685_v18  ;;  %v750_v18 = vpop.f32.mrf.mxu0 }
 0x1b7   : > { %v650_v5 = vadd.f32 %v620_v3, %v579_v1 }
 0x1b9   : > { %779 = vrot.lane.b32.xlu2 %v650_v5, %s1281_s12 }
 0x1bc   : > { %v573_v10 = vpop.permute.xlu1 %572  ;;  %v628_v19 = vpop.permute.xlu2 %627 }
 0x1bd   : > { %v578_v11 = vadd.f32 %v573_v10, %v493_v8  ;;  %v634_v12 = vpop.permute.xlu0 %633  ;;  %787 = vrot.lane.b32.xlu0 %v710_v9, %s1281_s12  ;;  %v632_v38 = vadd.f32 %v628_v19, %v1723_v25  ;;  %v1196_v25 = vld [vmem:[%s1824_s2] ss:$0 sm:$0xff] }
 0x1be   : > { %v639_v31 = vadd.f32 %v634_v12, %v562_v29  ;;  %v1197_v19 = vld [vmem:[%s1826_s4] ss:$0 sm:$0xff] }
 0x1bf   : > { %v649_v13 = vadd.f32 %v618_v50, %v578_v11 }
 0x1c1   : > { %777 = vrot.lane.b32.xlu1 %v649_v13, %s1281_s12 }
 0x1c4   : > { %v626_v14 = vpop.permute.xlu1 %625  ;;  %v695_v33 = vpop.permute.xlu2 %694 }
 0x1c5   : > { %v567_v15 = vpop.permute.xlu0 %566  ;;  %v631_v44 = vadd.f32 %v626_v14, %v1710_v23 }
 0x1c6   : > { %v571_v21 = vadd.f32 %v567_v15, %v486_v16 }
 0x1cc   : > { %v559_v17 = vpop.permute.xlu1 %558  ;;  %v758_v45 = vpop.permute.xlu2 %757 }
 0x1cd   : > { %v644_v24 = vpop.permute.xlu0 %643  ;;  %v563_v20 = vadd.f32 %v559_v17, %v1703_v22  ;;  %v700_v22 = vadd.f32 %v695_v33, %v631_v44 }
 0x1ce   : > { %v648_v26 = vadd.f32 %v644_v24, %v571_v21 }
 0x1d0   : > { %v711_v28 = vadd.f32 %v689_v27, %v648_v26 }
 0x1d2   : > { %789 = vrot.lane.b32.xlu1 %v711_v28, %s1281_s12 }
 0x1d4   : > { %v636_v32 = vpop.permute.xlu1 %635 }
 0x1d5   : > { %v703_v34 = vpop.permute.xlu0 %702  ;;  %v640_v37 = vadd.f32 %v636_v32, %v563_v20 }
 0x1d6   : > { %v708_v35 = vadd.f32 %v703_v34, %v639_v31 }
 0x1d8   : > { %v763_v36 = vadd.f32 %v748_v30, %v708_v35 }
 0x1da   : > { %797 = vrot.lane.b32.xlu2 %v763_v36, %s1281_s12 }
 0x1dc   : > { %v705_v39 = vpop.permute.xlu1 %704 }
 0x1dd   : > { %v709_v40 = vadd.f32 %v705_v39, %v640_v37  ;;  %v697_v41 = vpop.permute.xlu0 %696 }
 0x1de   : > { %v701_v42 = vadd.f32 %v697_v41, %v632_v38 }
 0x1df   : > { %v764_v46 = vadd.f32 %v750_v18, %v709_v40 }
 0x1e0   : > { %v762_v47 = vadd.f32 %v758_v45, %v701_v42 }
 0x1e1   : > { %799 = vrot.lane.b32.xlu0 %v764_v46, %s1281_s12 }
 0x1e2   : > { %809 = vrot.lane.b32.xlu2 %v762_v47, %s1281_s12 }
 0x1e4   : > { %v756_v48 = vpop.permute.xlu1 %755 }
 0x1e5   : > { %v761_v49 = vadd.f32 %v756_v48, %v700_v22  ;;  %v506_v50 = vpop.permute.xlu0 %505 }
 0x1e6   : > { %v511_v59 = vadd.f32 %v506_v50, %v1744_v43 }
 0x1e7   : > { %807 = vrot.lane.b32.xlu1 %v761_v49, %s1281_s12 }
 0x1e9   : > { %818 = vrot.lane.b32.xlu0 %v1196_v25, %s1281_s12 }
 0x1ec   : > { %v508_v51 = vpop.permute.xlu1 %507 }
 0x1ed   : > { %v512_v60 = vadd.f32 %v508_v51, %v1748_v55 }
 0x203   : > { %v768_v23 = vpop.permute.xlu2 %767 }
 0x204   : > { %v773_v61 = vmax.f32 %v511_v59, %v768_v23 }
 0x213   : > { %v780_v56 = vpop.permute.xlu2 %779 }
 0x227   : > { %v770_v52 = vpop.permute.xlu0 %769 }
 0x228   : > { %v774_v62 = vmax.f32 %v512_v60, %v770_v52 }
 0x22a   : > { %v784_v2 = vmax.f32 %v774_v62, %v780_v56 }
 0x22f   : > { %v788_v58 = vpop.permute.xlu0 %787 }
 0x233   : > { %v778_v57 = vpop.permute.xlu1 %777 }
 0x234   : > { %v798_v63 = vpop.permute.xlu2 %797  ;;  %v783_v0 = vmax.f32 %v773_v61, %v778_v57 }
 0x236   : > { %v793_v4 = vmax.f32 %v783_v0, %v788_v58 }
 0x238   : > { %v803_v7 = vmax.f32 %v793_v4, %v798_v63 }
 0x23c   : > { %v810_v8 = vpop.permute.xlu2 %809 }
 0x244   : > { %v790_v1 = vpop.permute.xlu1 %789 }
 0x245   : > { %v794_v5 = vmax.f32 %v784_v2, %v790_v1 }
 0x253   : > { %v800_v3 = vpop.permute.xlu0 %799 }
 0x254   : > { %v804_v6 = vmax.f32 %v794_v5, %v800_v3 }
 0x256   : > { %v814_v10 = vmax.f32 %v804_v6, %v810_v8 }
 0x259   : > { %v808_v9 = vpop.permute.xlu1 %807 }
 0x25a   : > { %v813_v11 = vmax.f32 %v803_v7, %v808_v9 }
 0x25b   : > { %v819_v12 = vpop.permute.xlu0 %818 }
 0x25c   : > { %v821_v13 = vadd.f32 %v819_v12, %v813_v11  ;;  %v822_v43 = vadd.f32 %v819_v12, %v814_v10 }
 0x25e   : > { %v823_v14 = vmax.f32 %v821_v13, 0.0  ;;  %v824_v55 = vmax.f32 %v822_v43, 0.0 }
 0x260   : > { %v825_v15 = vpack.c.bf16 %v824_v55, %v823_v14 }
 0x262   : > { %835 = vrot.lane.b32.xlu1 %v825_v15, %s1279_s10 }
 0x2d4   : > { %v836_v16 = vpop.permute.xlu1 %835 }
 0x2d5   : > { %1104 = vmatmul.msk.bf16.vlgmr.msrb.gmra.mxu1 %vm849_vm5, %v836_v16 }
 0x352   : > { %v862_v21 = vpop.f32.mrf.mxu1 }
 0x353   : > { %v863_v17 = vadd.f32 %v1197_v19, %v862_v21 }
 0x355   : > { %v867_v24 = vmax.f32 %v863_v17, 0.0  ;;  %v869_v29 = vsub.f32 0.0, %v863_v17 }
 0x357   : > { %881 = vrot.lane.b32.xlu2 %v867_v24, %s1281_s12  ;;  %v871_v30 = vmul.f32 1.442695, %v869_v29 }
 0x359   : > { %1198 = vpow2.f32 %v871_v30 }
 0x35a   : > { %v864_v26 = vpop.f32.mrf.mxu1 }
 0x35b   : > { %v865_v27 = vadd.f32 %v1197_v19, %v864_v26 }
 0x35d   : > { %v868_v28 = vmax.f32 %v865_v27, 0.0  ;;  %v870_v35 = vsub.f32 0.0, %v865_v27 }
 0x35f   : > { %883 = vrot.lane.b32.xlu0 %v868_v28, %s1281_s12  ;;  %v1199_v31 = vpop.eup %1198  ;;  %v873_v38 = vmul.f32 1.442695, %v870_v35  ;;  %s917_s12 = scalar_lea.hbm %s1827_s5, %s1128_s7 }
 0x360   : > { %v875_v32 = vadd.f32 1.0, %v1199_v31  ;;  %s920_s14 = sshll.u32 %s917_s12, 4  ;;  %s921_s14 = int_to_ptr.hbm [resolvable:$true] %s920_s14 }
 0x361   : > { %s1220_s15 = sshra.s32 %s921_s14, 4  ;;  %s1221_s15 = int_to_ptr.hbm [resolvable:$true] %s1220_s15 }
 0x362   : > { %1200 = vrcp.f32 %v875_v32  ;;  %s1222_s22 = scalar_lea.hbm %s1221_s15, 16  ;;  %p1227_p0 = scmp.lt.s32.totalorder %s1221_s15, %s1827_s5 }
 0x363   : > { %1202 = vpow2.f32 %v873_v38  ;;  %p1223_p11 = scmp.ne.s32.totalorder %s1221_s15, %s1222_s22  ;;  %p1228_p1 = scmp.lt.s32.totalorder %s1226_s23, %s1222_s22 }
 0x365   : > { %p1224_p12 = pnand %p1223_p11, %p1352_p5  ;;  %p1229_p2 = por %p1228_p1, %p1227_p0 }
 0x367   : > { %p1225_p13 = pneg %p1224_p12 }
 0x368   : > { %v1201_v33 = vpop.eup %1200 }
 0x369   : > { %v889_v34 = vsub.f32 1.0, %v1201_v33  ;;  %v1203_v40 = vpop.eup %1202  ;;  %p1230_p3 = pnand %p1229_p2, %p1225_p13 }
 0x36a   : > { %v876_v41 = vadd.f32 1.0, %v1203_v40 }
 0x36b   : > { %v891_v20 = vmul.f32 %v889_v34, %v823_v14 }
 0x36c   : > { %1204 = vrcp.f32 %v876_v41 }
 0x372   : > { %v1205_v18 = vpop.eup %1204 }
 0x373   : > { %v890_v42 = vsub.f32 1.0, %v1205_v18 }
 0x375   : > { %v892_v45 = vmul.f32 %v890_v42, %v824_v55 }
 0x3b1   : > { %v882_v36 = vpop.permute.xlu2 %881 }
 0x3b2   : > { %v887_v37 = vmul.f32 %v1201_v33, %v882_v36 }
 0x3b4   : > { %v893_v39 = vadd.f32 %v891_v20, %v887_v37 }
 0x3b6   : > { %897 = vrot.lane.b32.xlu1 %v893_v39, %s1279_s10 }
 0x3d1   : > { %v884_v44 = vpop.permute.xlu0 %883 }
 0x3d2   : > { %v888_v46 = vmul.f32 %v1205_v18, %v884_v44 }
 0x3d4   : > { %v894_v47 = vadd.f32 %v892_v45, %v888_v46 }
 0x3d6   : > { %899 = vrot.lane.b32.xlu2 %v894_v47, %s1279_s10  ;;  %s906_s10 = scalar_lea.sflag [#allocation3], %s216_s30 }
 0x428   : > { %v898_v22 = vpop.permute.xlu1 %897 }
 0x429   : > { %903 = vst.msk [vmem:[%s218_s8] sm:$0xff] %vm849_vm5, %v898_v22 }
 0x430   : > { %v900_v48 = vpop.permute.xlu2 %899 }
 0x431   : > { %904 = vst.msk [vmem:[%s218_s8 + $0x8] sm:$0xff] %vm849_vm5, %v900_v48 }
 0x432   : > { %1233 = shalt.err (!%p1230_p3)
}
 0x433   : > { %s1282_s30 = smov 128   ;;  %s1283_s6 = smov 8  }
 0x434   : > { %1129 = dma.vmem_to_hbm [thread:$0]  (%p1352_p5), %s919_s13, 256, %s921_s14, %s906_s10, %s1282_s30, %s1282_s30, %s1283_s6  }
 0x435 PF: > { %p1135_p4 = scmp.ge.s32.totalorder %s1268_s21, 2  ;;  %s935_s7 = sand.u32 1, %s1256_s18  }
 0x436   : > { %s936_s8 = scalar_lea.sflag [#allocation3], %s935_s7 }
 0x437   : > { %p1132_p7 = pnand %p1135_p4, %p1356_p6 }
 0x439   : > { %p1133_p8 = pneg %p1132_p7 }
 0x43b   : > { %1251 = dma.done.wait (%p1133_p8), %s936_s8, 256  }
 0x43c   : > { %1253 = vsyncadd (%p1133_p8), %s936_s8, 4294967040  ;;  %p15_p9 = scmp.ge.s32.totalorder %s1339_s24, 4   ;;  %s1838_s18 = smov %s1260_s19 }
 0x43d   : > { %s1839_s19 = smov %s1264_s20  ;;  %s1840_s20 = smov %s1350_s27 }
 0x43e   : > { %s1841_s21 = smov %s1339_s24  ;;  %17 = sbr.rel (!%p15_p9) target bundleno = 3 (0x3), region = 75 }
 0x443   :  { %942 = vsyncpa [#allocation3], 1 }
 0x444   :  { %944 = vsyncpa [#allocation3 + $0x1], 1 }

</bundles_post_ra>
